<compile_context>
chip_gen: v6e
topology: v6e:2x2x1
jax: 0.10.0
libtpu: 0.0.40
codegen_flags: <defaults>
</compile_context>

<pallas_src>
import functools

import jax
import jax.numpy as jnp
from jax.experimental import pallas as pl
from jax.experimental.pallas import tpu as pltpu


def _random_rational_kernel(percentage, mask_token,
                            x_ref, logits_ref, u_ref,
                            policy_ref, chosen_ref, mask_ref, masked_ref):
    """Elementwise body for one (tile_rows, cols) block."""
    l0 = logits_ref[0, :, :]
    l1 = logits_ref[1, :, :]

    # softmax over the size-2 channel via the sigmoid identity:
    #   p1 = e^l1 / (e^l0 + e^l1) = sigmoid(l1 - l0),  p0 = 1 - p1
    d = l1 - l0
    p1 = 1.0 / (1.0 + jnp.exp(-d))
    p0 = 1.0 - p1

    # mask = rand < percentage (raw comparison, exactly as in the torch code)
    mask = u_ref[...] < jnp.float32(percentage)

    x = x_ref[...]
    masked = jnp.where(mask, x, jnp.full_like(x, mask_token))
    # gather(policy, -1, mask.long()): index 1 where mask is True, else 0
    chosen = jnp.where(mask, p1, p0)

    policy_ref[0, :, :] = p0
    policy_ref[1, :, :] = p1
    chosen_ref[...] = chosen
    mask_ref[...] = mask.astype(jnp.int8)
    masked_ref[...] = masked


def _choose_tiling(n):
    """Pick a lane/sublane-dense (rows, cols) layout and a row-tile size."""
    cols = 128 if n <= 8 * 128 else 512
    rows = pl.cdiv(n, cols)
    tile_rows = 256                     # (256, 512) f32 = 512 KiB per plane
    if rows <= tile_rows:
        tile_rows = rows                # single full-extent block: always legal
    else:
        rows = pl.cdiv(rows, tile_rows) * tile_rows
    return rows, cols, tile_rows


def random_rational_extractor(x, key, percentage=50, mask_token=0):
    """Pallas-backed forward pass of RandomRationalExtractor.

    x: (B, S) integer token ids; key: jax PRNG key (replaces torch.rand).
    Returns the same dict of outputs as the PyTorch module.
    """
    B, S = x.shape
    N = B * S
    R, C, TR = _choose_tiling(N)
    padded = R * C

    # Flatten + pad to a lane-dense (R, C) slab.
    xf = x.reshape(-1)
    if padded > N:
        xf = jnp.pad(xf, (0, padded - N))
    xf = xf.reshape(R, C)

    # torch.rand equivalents, generated once in the wrapper (channel-first).
    k_logits, k_mask = jax.random.split(key)
    logits2 = jax.random.uniform(k_logits, (2, R, C), dtype=jnp.float32)
    u = jax.random.uniform(k_mask, (R, C), dtype=jnp.float32)

    kernel = functools.partial(_random_rational_kernel,
                               float(percentage), int(mask_token))

    grid = (R // TR,)
    plane = pl.BlockSpec((TR, C), lambda i: (i, 0))
    two_plane = pl.BlockSpec((2, TR, C), lambda i: (0, i, 0))

    policy2, chosen, mask_i8, masked = pl.pallas_call(
        kernel,
        grid=grid,
        in_specs=[plane, two_plane, plane],
        out_specs=(two_plane, plane, plane, plane),
        out_shape=(
            jax.ShapeDtypeStruct((2, R, C), jnp.float32),   # policy (chan-first)
            jax.ShapeDtypeStruct((R, C), jnp.float32),      # chosen policy
            jax.ShapeDtypeStruct((R, C), jnp.int8),         # mask
            jax.ShapeDtypeStruct((R, C), x.dtype),          # masked_input
        ),
        compiler_params=pltpu.CompilerParams(
            dimension_semantics=("parallel",)),
    )(xf, logits2, u)

    # Glue back to the PyTorch-shaped outputs (strip padding, restore (B, S)).
    def unflat(a):
        return a.reshape(-1)[:N].reshape(B, S)

    def unflat2(a):                      # (2, R, C) -> (B, S, 2)
        return jnp.moveaxis(a.reshape(2, -1)[:, :N].reshape(2, B, S), 0, -1)

    return {
        'policy_logits': unflat2(logits2),
        'policy': unflat2(policy2),
        'chosen_policy': unflat(chosen).reshape(B, S, 1),
        'mask': unflat(mask_i8).astype(jnp.bool_),
        'masked_input': unflat(masked),
    }


if __name__ == "__main__":
    key = jax.random.PRNGKey(0)
    kx, krand = jax.random.split(key)

    B, S = 2, 128   # "batch of sequences" -> int32 token ids
    x = jax.random.randint(kx, (B, S), minval=0, maxval=1000, dtype=jnp.int32)

    out = random_rational_extractor(x, krand, percentage=50, mask_token=0)
    out = jax.block_until_ready(out)

    # shape checks
    assert out['policy_logits'].shape == (B, S, 2)
    assert out['policy'].shape == (B, S, 2)
    assert out['chosen_policy'].shape == (B, S, 1)
    assert out['mask'].shape == (B, S)
    assert out['masked_input'].shape == (B, S)
    assert out['masked_input'].dtype == x.dtype

    # value checks
    assert bool(jnp.all((out['policy_logits'] >= 0.0) & (out['policy_logits'] < 1.0)))
    assert bool(jnp.allclose(out['policy'].sum(-1), 1.0, atol=1e-5))
    ref_policy = jax.nn.softmax(out['policy_logits'], axis=-1)
    assert bool(jnp.allclose(out['policy'], ref_policy, atol=1e-5))
    ref_chosen = jnp.take_along_axis(
        out['policy'], out['mask'].astype(jnp.int32)[..., None], axis=-1)
    assert bool(jnp.allclose(out['chosen_policy'], ref_chosen, atol=1e-6))
    # percentage=50 compared raw against U[0,1): mask is all True, as in torch
    assert bool(jnp.all(out['mask']))
    assert bool(jnp.all(out['masked_input'] == x))

    # exercise the non-trivial masking path too (fractional "percentage")
    out2 = random_rational_extractor(x, krand, percentage=0.3, mask_token=7)
    out2 = jax.block_until_ready(out2)
    m2 = out2['mask']
    assert bool(jnp.all(jnp.where(m2, x, 7) == out2['masked_input']))
    assert bool(jnp.allclose(
        out2['chosen_policy'][..., 0],
        jnp.where(m2, out2['policy'][..., 1], out2['policy'][..., 0]),
        atol=1e-6))

    print("KERNEL_OK")
</pallas_src>

<mosaic_0001>
module attributes {stable_mosaic.version = 11 : i64} {
  func.func @_random_rational_kernel(%arg0: i32, %arg1: memref<2x128xi32, #tpu.memory_space<vmem>>, %arg2: memref<2x2x128xf32, #tpu.memory_space<vmem>>, %arg3: memref<2x128xf32, #tpu.memory_space<vmem>>, %arg4: memref<2x2x128xf32, #tpu.memory_space<vmem>>, %arg5: memref<2x128xf32, #tpu.memory_space<vmem>>, %arg6: memref<2x128xi8, #tpu.memory_space<vmem>>, %arg7: memref<2x128xi32, #tpu.memory_space<vmem>>) attributes {dimension_semantics = [#tpu.dimension_semantics<parallel>], iteration_bounds = array<i64: 1>, scalar_prefetch = 0 : i64, scratch_operands = 0 : i64, tpu.core_type = #tpu.core_type<tc>, window_params = [{transform_indices = @transform_0, window_bounds = array<i64: 2, 128>}, {transform_indices = @transform_1, window_bounds = array<i64: 2, 2, 128>}, {transform_indices = @transform_2, window_bounds = array<i64: 2, 128>}, {transform_indices = @transform_3, window_bounds = array<i64: 2, 2, 128>}, {transform_indices = @transform_4, window_bounds = array<i64: 2, 128>}, {transform_indices = @transform_5, window_bounds = array<i64: 2, 128>}, {transform_indices = @transform_6, window_bounds = array<i64: 2, 128>}]} {
    %c0 = arith.constant 0 : index
    %c0_0 = arith.constant 0 : index
    %c0_1 = arith.constant 0 : index
    %0 = vector.load %arg2[%c0, %c0_0, %c0_1] : memref<2x2x128xf32, #tpu.memory_space<vmem>>, vector<1x2x128xf32>
    %1 = vector.shape_cast %0 : vector<1x2x128xf32> to vector<2x128xf32>
    %c1 = arith.constant 1 : index
    %c0_2 = arith.constant 0 : index
    %c0_3 = arith.constant 0 : index
    %2 = vector.load %arg2[%c1, %c0_2, %c0_3] : memref<2x2x128xf32, #tpu.memory_space<vmem>>, vector<1x2x128xf32>
    %3 = vector.shape_cast %2 : vector<1x2x128xf32> to vector<2x128xf32>
    %4 = arith.subf %3, %1 : vector<2x128xf32>
    %cst = arith.constant 0.000000e+00 : f32
    %5 = vector.broadcast %cst : f32 to vector<2x128xf32>
    %6 = arith.subf %5, %4 : vector<2x128xf32>
    %7 = math.exp %6 : vector<2x128xf32>
    %cst_4 = arith.constant 1.000000e+00 : f32
    %8 = vector.broadcast %cst_4 : f32 to vector<2x128xf32>
    %9 = arith.addf %8, %7 : vector<2x128xf32>
    %cst_5 = arith.constant 1.000000e+00 : f32
    %10 = vector.broadcast %cst_5 : f32 to vector<2x128xf32>
    %11 = arith.divf %10, %9 : vector<2x128xf32>
    %cst_6 = arith.constant 1.000000e+00 : f32
    %12 = vector.broadcast %cst_6 : f32 to vector<2x128xf32>
    %13 = arith.subf %12, %11 : vector<2x128xf32>
    %c0_7 = arith.constant 0 : index
    %c0_8 = arith.constant 0 : index
    %14 = vector.load %arg3[%c0_7, %c0_8] : memref<2x128xf32, #tpu.memory_space<vmem>>, vector<2x128xf32>
    %cst_9 = arith.constant 5.000000e+01 : f32
    %15 = vector.broadcast %cst_9 : f32 to vector<2x128xf32>
    %16 = arith.cmpf olt, %14, %15 : vector<2x128xf32>
    %c0_10 = arith.constant 0 : index
    %c0_11 = arith.constant 0 : index
    %17 = vector.load %arg1[%c0_10, %c0_11] : memref<2x128xi32, #tpu.memory_space<vmem>>, vector<2x128xi32>
    %c0_i32 = arith.constant 0 : i32
    %18 = vector.broadcast %c0_i32 : i32 to vector<2x128xi32>
    %19 = arith.select %16, %17, %18 : vector<2x128xi1>, vector<2x128xi32>
    %20 = arith.select %16, %11, %13 : vector<2x128xi1>, vector<2x128xf32>
    %c0_12 = arith.constant 0 : index
    %c0_13 = arith.constant 0 : index
    %c0_14 = arith.constant 0 : index
    %21 = vector.load %arg4[%c0_12, %c0_13, %c0_14] : memref<2x2x128xf32, #tpu.memory_space<vmem>>, vector<1x2x128xf32>
    %22 = vector.shape_cast %21 : vector<1x2x128xf32> to vector<2x128xf32>
    %23 = vector.shape_cast %13 : vector<2x128xf32> to vector<1x2x128xf32>
    tpu.vector_store %arg4[%c0_12, %c0_13, %c0_14], %23 {strides = array<i32>} : memref<2x2x128xf32, #tpu.memory_space<vmem>>, vector<1x2x128xf32>,
    %c1_15 = arith.constant 1 : index
    %c0_16 = arith.constant 0 : index
    %c0_17 = arith.constant 0 : index
    %24 = vector.load %arg4[%c1_15, %c0_16, %c0_17] : memref<2x2x128xf32, #tpu.memory_space<vmem>>, vector<1x2x128xf32>
    %25 = vector.shape_cast %24 : vector<1x2x128xf32> to vector<2x128xf32>
    %26 = vector.shape_cast %11 : vector<2x128xf32> to vector<1x2x128xf32>
    tpu.vector_store %arg4[%c1_15, %c0_16, %c0_17], %26 {strides = array<i32>} : memref<2x2x128xf32, #tpu.memory_space<vmem>>, vector<1x2x128xf32>,
    %c0_18 = arith.constant 0 : index
    %c0_19 = arith.constant 0 : index
    %27 = vector.load %arg5[%c0_18, %c0_19] : memref<2x128xf32, #tpu.memory_space<vmem>>, vector<2x128xf32>
    tpu.vector_store %arg5[%c0_18, %c0_19], %20 {strides = array<i32>} : memref<2x128xf32, #tpu.memory_space<vmem>>, vector<2x128xf32>,
    %28 = arith.extui %16 : vector<2x128xi1> to vector<2x128xi8>
    %c0_20 = arith.constant 0 : index
    %c0_21 = arith.constant 0 : index
    %29 = vector.load %arg6[%c0_20, %c0_21] : memref<2x128xi8, #tpu.memory_space<vmem>>, vector<2x128xi8>
    tpu.vector_store %arg6[%c0_20, %c0_21], %28 {strides = array<i32>} : memref<2x128xi8, #tpu.memory_space<vmem>>, vector<2x128xi8>,
    %c0_22 = arith.constant 0 : index
    %c0_23 = arith.constant 0 : index
    %30 = vector.load %arg7[%c0_22, %c0_23] : memref<2x128xi32, #tpu.memory_space<vmem>>, vector<2x128xi32>
    tpu.vector_store %arg7[%c0_22, %c0_23], %19 {strides = array<i32>} : memref<2x128xi32, #tpu.memory_space<vmem>>, vector<2x128xi32>,
    return
  }
  func.func @transform_0(%arg0: i32) -> (i32, i32) {
    %c0_i32 = arith.constant 0 : i32
    %c0_i32_0 = arith.constant 0 : i32
    return %arg0, %c0_i32 : i32, i32
  }
  func.func @transform_1(%arg0: i32) -> (i32, i32, i32) {
    %c0_i32 = arith.constant 0 : i32
    %c0_i32_0 = arith.constant 0 : i32
    %c0_i32_1 = arith.constant 0 : i32
    return %c0_i32, %arg0, %c0_i32_0 : i32, i32, i32
  }
  func.func @transform_2(%arg0: i32) -> (i32, i32) {
    %c0_i32 = arith.constant 0 : i32
    %c0_i32_0 = arith.constant 0 : i32
    return %arg0, %c0_i32 : i32, i32
  }
  func.func @transform_3(%arg0: i32) -> (i32, i32, i32) {
    %c0_i32 = arith.constant 0 : i32
    %c0_i32_0 = arith.constant 0 : i32
    %c0_i32_1 = arith.constant 0 : i32
    return %c0_i32, %arg0, %c0_i32_0 : i32, i32, i32
  }
  func.func @transform_4(%arg0: i32) -> (i32, i32) {
    %c0_i32 = arith.constant 0 : i32
    %c0_i32_0 = arith.constant 0 : i32
    return %arg0, %c0_i32 : i32, i32
  }
  func.func @transform_5(%arg0: i32) -> (i32, i32) {
    %c0_i32 = arith.constant 0 : i32
    %c0_i32_0 = arith.constant 0 : i32
    return %arg0, %c0_i32 : i32, i32
  }
  func.func @transform_6(%arg0: i32) -> (i32, i32) {
    %c0_i32 = arith.constant 0 : i32
    %c0_i32_0 = arith.constant 0 : i32
    return %arg0, %c0_i32 : i32, i32
  }
}

</mosaic_0001>

<bundles_post_ra>
// kernel: tpu_custom_call.1
= control target key start
LH: loop header
LB: loop body
LE: loop exit
PB: predicated region body
PF: predicated region fallthrough
CT: control target
= control target key end

     0   :  { %12 = vsyncpa [#allocation3], 0  ;;  %s362_s0 = inlined_call_operand.hbm [shape: s32[2,128], index: 0, kind: input, shape index: {}]   ;;  %s363_s1 = inlined_call_operand.hbm [shape: f32[2,2,128], index: 1, kind: input, shape index: {}]   ;;  %s364_s2 = inlined_call_operand.vmem [shape: f32[2,128], index: 2, kind: input, shape index: {}]   ;;  %s365_s3 = inlined_call_operand.hbm [shape: f32[2,2,128], index: 3, kind: output, shape index: {0}]   ;;  %s366_s4 = inlined_call_operand.hbm [shape: f32[2,128], index: 4, kind: output, shape index: {1}]   ;;  %s367_s5 = inlined_call_operand.hbm [shape: s8[2,128], index: 5, kind: output, shape index: {2}]   ;;  %s368_s6 = inlined_call_operand.hbm [shape: s32[2,128], index: 6, kind: output, shape index: {3}]  }
   0x1   :  { %13 = vsyncpa [#allocation6], 0 }
   0x2   :  { %14 = vsyncpa [#allocation4], 0 }
   0x3   :  { %15 = vsyncpa [#allocation9], 0 }
   0x4   :  { %16 = vsyncpa [#allocation12], 0  ;;  %s281_s21 = smov [#allocation2]   ;;  %s282_s23 = smov [#allocation5]  }
   0x5   :  { %s23_s22 = sshll.u32 %s281_s21, 4  ;;  %s32_s24 = sshll.u32 %s282_s23, 4  ;;  %s24_s22 = int_to_ptr.vmem [resolvable:$true] %s23_s22  ;;  %s33_s24 = int_to_ptr.vmem [resolvable:$true] %s32_s24 }
   0x6   :  { %s159_s25 = scalar_lea.vmem %s24_s22, 32  ;;  %p164_p1 = scmp.lt.s32.totalorder %s24_s22, %s24_s22 }
   0x7   :  { %p160_p0 = scmp.ne.s32.totalorder %s24_s22, %s159_s25  ;;  %p165_p2 = scmp.lt.s32.totalorder %s159_s25, %s159_s25 }
   0x9   :  { %p166_p3 = por %p165_p2, %p164_p1 }
   0xb   :  { %p167_p4 = pnand %p166_p3, %p160_p0 }
   0xd   :  { %170 = shalt.err (!%p167_p4)
}
   0xe   :  { %26 = dma.hbm_to_vmem [thread:$0]  %s362_s0, 32, %s24_s22, [#allocation3]  }
   0xf   :  { %s179_s28 = scalar_lea.vmem %s33_s24, 64  ;;  %p184_p6 = scmp.lt.s32.totalorder %s33_s24, %s33_s24 }
  0x10   :  { %p180_p5 = scmp.ne.s32.totalorder %s33_s24, %s179_s28  ;;  %p185_p7 = scmp.lt.s32.totalorder %s179_s28, %s179_s28 }
  0x12   :  { %p186_p8 = por %p185_p7, %p184_p6 }
  0x14   :  { %p187_p9 = pnand %p186_p8, %p180_p5 }
  0x16   :  { %190 = shalt.err (!%p187_p9)
}
  0x17   :  { %s283_s29 = smov 32   ;;  %s284_s30 = smov 2  }
  0x18   :  { %38 = dma.hbm_to_vmem [thread:$0]  %s363_s1, 64, %s33_s24, [#allocation6], %s283_s29, %s283_s29, %s284_s30  }
  0x19   :  { %271 = dma.done.wait [#allocation3], 32  }
  0x1a   :  { %272 = vsyncadd [#allocation3], 4294967264 }
  0x1b   :  { %273 = dma.done.wait [#allocation6], 64  }
  0x1c   :  { %274 = vsyncadd [#allocation6], 4294967232  ;;  %vm72_vm0 = vcmask 1040384   ;;  %vm73_vm1 = vsmask.f32 256  ;;  %s285_s0 = smov [#allocation11]  }
  0x1d   :  { %s117_s9 = sshll.u32 %s285_s0, 4  ;;  %v49_v0 = vld [vmem:[#allocation5] sm:$0x3]  ;;  %v51_v1 = vld [vmem:[#allocation5 + $0x2] sm:$0x3]  ;;  %vm337_vm3 = vmand %vm72_vm0, %vm73_vm1  ;;  %v286_v9 = vmov 0   ;;  %s118_s9 = int_to_ptr.vmem [resolvable:$true] %s117_s9 }
  0x1e   :  { %v60_v2 = vld [vmem:[%s364_s2] sm:$0x3]  ;;  %v52_v3 = vsub.f32 %v51_v1, %v49_v0  ;;  %v75_v6 = vld [vmem:[#allocation10] sm:$0x1]  ;;  %s191_s1 = scalar_lea.vmem %s118_s9, 32  ;;  %p196_p11 = scmp.lt.s32.totalorder %s118_s9, %s118_s9 }
  0x1f   :  { %vm61_vm2 = vcmp.lt.f32.partialorder %v60_v2, 50.0  ;;  %v62_v5 = vld [vmem:[#allocation2] sm:$0x3]  ;;  %p192_p10 = scmp.ne.s32.totalorder %s118_s9, %s191_s1  ;;  %p197_p12 = scmp.lt.s32.totalorder %s191_s1, %s191_s1 }
  0x20   :  { %vm69_vm4 = vmpackc.low %vm61_vm2, %vm61_vm2  ;;  %v63_v7 = vsel %vm61_vm2, %v62_v5, 0  ;;  %v53_v8 = vsub.f32 0.0, %v52_v3 }
  0x21   :  { %vm70_vm5 = vmpackc.even %vm69_vm4, %vm69_vm4  ;;  %78 = vst [vmem:[#allocation11] sm:$0x3] %v63_v7  ;;  %p198_p13 = por %p197_p12, %p196_p11 }
  0x22   :  { %v71_v10 = vsel %vm70_vm5, 16843009, %v286_v9 }
  0x23   :  { %p199_p0 = pnand %p198_p13, %p192_p10 }
  0x25   :  { %202 = shalt.err (!%p199_p0)
}
  0x26   :  { %120 = dma.vmem_to_hbm [thread:$0]  %s118_s9, 32, %s368_s6, [#allocation12]   ;;  %v54_v11 = vmul.f32 1.442695, %v53_v8  ;;  %v76_v12 = vsel %vm337_vm3, %v71_v10, %v75_v6 }
  0x27   :  { %77 = vst [vmem:[#allocation10] sm:$0x1] %v76_v12  ;;  %s287_s13 = smov [#allocation7]   ;;  %s288_s15 = smov [#allocation8]  }
  0x28   :  { %147 = vpow2.f32 %v54_v11  ;;  %s84_s14 = sshll.u32 %s287_s13, 4  ;;  %s97_s16 = sshll.u32 %s288_s15, 4  ;;  %s85_s14 = int_to_ptr.vmem [resolvable:$true] %s84_s14  ;;  %s98_s16 = int_to_ptr.vmem [resolvable:$true] %s97_s16 }
  0x29   :  { %s289_s17 = smov [#allocation10]   ;;  %s211_s6 = scalar_lea.vmem %s85_s14, 64 }
  0x2a   :  { %s107_s18 = sshll.u32 %s289_s17, 4  ;;  %p212_p1 = scmp.ne.s32.totalorder %s85_s14, %s211_s6  ;;  %s108_s18 = int_to_ptr.vmem [resolvable:$true] %s107_s18 }
  0x2b   :  { %p216_p2 = scmp.lt.s32.totalorder %s85_s14, %s85_s14  ;;  %p217_p3 = scmp.lt.s32.totalorder %s211_s6, %s211_s6 }
  0x2d   :  { %p218_p4 = por %p217_p3, %p216_p2 }
  0x2f   :  { %p219_p5 = pnand %p218_p4, %p212_p1 }
  0x35   :  { %v148_v13 = vpop.eup %147 }
  0x36   :  { %v56_v14 = vadd.f32 1.0, %v148_v13 }
  0x38   :  { %149 = vrcp.f32 %v56_v14 }
  0x45   :  { %v150_v15 = vpop.eup %149 }
  0x46   :  { %v59_v16 = vsub.f32 1.0, %v150_v15  ;;  %67 = vst [vmem:[#allocation7 + $0x2] sm:$0x3] %v150_v15 }
  0x48   :  { %v64_v17 = vsel %vm61_vm2, %v150_v15, %v59_v16  ;;  %65 = vst [vmem:[#allocation7] sm:$0x3] %v59_v16 }
  0x49   :  { %68 = vst [vmem:[#allocation8] sm:$0x3] %v64_v17 }
  0x4a   :  { %222 = shalt.err (!%p219_p5)
}
  0x4b   :  { %90 = dma.vmem_to_hbm [thread:$0]  %s85_s14, 64, %s365_s3, [#allocation4], %s283_s29, %s283_s29, %s284_s30  }
  0x4c   :  { %s231_s21 = scalar_lea.vmem %s98_s16, 32  ;;  %p236_p7 = scmp.lt.s32.totalorder %s98_s16, %s98_s16 }
  0x4d   :  { %p232_p6 = scmp.ne.s32.totalorder %s98_s16, %s231_s21  ;;  %p237_p8 = scmp.lt.s32.totalorder %s231_s21, %s231_s21 }
  0x4f   :  { %p238_p9 = por %p237_p8, %p236_p7 }
  0x51   :  { %p239_p10 = pnand %p238_p9, %p232_p6 }
  0x53   :  { %242 = shalt.err (!%p239_p10)
}
  0x54   :  { %100 = dma.vmem_to_hbm [thread:$0]  %s98_s16, 32, %s366_s4, [#allocation9]  }
  0x55   :  { %s251_s24 = scalar_lea.vmem %s108_s18, 16  ;;  %s255_s25 = scalar_lea.vmem %s108_s18, 32 }
  0x56   :  { %p252_p11 = scmp.ne.s32.totalorder %s108_s18, %s251_s24  ;;  %p256_p12 = scmp.lt.s32.totalorder %s108_s18, %s108_s18 }
  0x57   :  { %p257_p13 = scmp.lt.s32.totalorder %s255_s25, %s251_s24 }
  0x59   :  { %p258_p0 = por %p257_p13, %p256_p12 }
  0x5b   :  { %p259_p1 = pnand %p258_p0, %p252_p11 }
  0x5d   :  { %262 = shalt.err (!%p259_p1)
}
  0x5e   :  { %110 = dma.vmem_to_hbm [thread:$0]  %s108_s18, 16, %s367_s5, [#allocation9]  }
  0x5f   :  { %275 = dma.done.wait [#allocation4], 64  }
  0x60   :  { %276 = vsyncadd [#allocation4], 4294967232 }
  0x61   :  { %277 = dma.done.wait [#allocation9], 48  }
  0x62   :  { %278 = vsyncadd [#allocation9], 4294967248 }
  0x63   :  { %279 = dma.done.wait [#allocation12], 32  }
  0x64   :  { %280 = vsyncadd [#allocation12], 4294967264 }
  0x65   :  { %133 = vsyncpa [#allocation3], 1 }
  0x66   :  { %134 = vsyncpa [#allocation6], 1 }
  0x67   :  { %135 = vsyncpa [#allocation4], 1 }
  0x68   :  { %136 = vsyncpa [#allocation9], 1 }
  0x69   :  { %137 = vsyncpa [#allocation12], 1 }

</bundles_post_ra>
